<compile_context>
chip_gen: v7x
topology: tpu7x:2x2x1
jax: 0.10.0
libtpu: 0.0.40
codegen_flags: <defaults>
</compile_context>

<pallas_src>
import functools

import jax
import jax.numpy as jnp
import numpy as np
from jax.experimental import pallas as pl
from jax.experimental.pallas import tpu as pltpu


def _sym_circular_conv(h, w_groups, bias, *, B, L, p):
    """Symmetric circular Conv1d + folded-BN affine over the cycle axis.

    h        : (B*L, Cin)  activation, cycle-major rows, channels on lanes
    w_groups : (p+1, Cin, Cout); group 0 = center tap, group s = the shared
               (BN-scale-folded) weight of the symmetric (+s, -s) tap pair
    bias     : (1, Cout)   folded BatchNorm shift
    """
    out = jnp.dot(h, w_groups[0], preferred_element_type=jnp.float32)
    for s in range(1, p + 1):
        sm = s % L
        if sm == 0:
            # +s and -s coincide modulo the cycle length: both taps see h.
            pair = 2.0 * h
        else:
            rolled = []
            for b in range(B):                      # static, tile-aligned slices
                hb = h[b * L:(b + 1) * L]           # (L, Cin)
                rolled.append(pltpu.roll(hb, sm, axis=0) +
                              pltpu.roll(hb, L - sm, axis=0))
            pair = rolled[0] if B == 1 else jnp.concatenate(rolled, axis=0)
        out = out + jnp.dot(pair, w_groups[s], preferred_element_type=jnp.float32)
    return out + bias


def _path_block_kernel(x_ref, w1_ref, b1_ref, w2_ref, b2_ref, o_ref,
                       *, B, L, p, nblk):
    """Fused PathBlock forward: all residual blocks, all batch rows, one call.

    x_ref : (B*L, C)            input (channel-last)
    w1_ref: (nblk, p+1, C, Ci)  conv1 tap-group weights (BN1 scale folded in)
    b1_ref: (nblk, 1, Ci)       folded BN1 shift
    w2_ref: (nblk, p+1, Ci, C)  conv2 tap-group weights (BN2 scale folded in)
    b2_ref: (nblk, 1, C)        folded BN2 shift
    o_ref : (B*L, C)            output
    """
    h = x_ref[...].astype(jnp.float32)              # (B*L, C), no-op cast for f32
    for blk in range(nblk):                         # static unroll over blocks
        res = h
        y = _sym_circular_conv(h, w1_ref[blk], b1_ref[blk], B=B, L=L, p=p)
        y = jnp.maximum(y, 0.0)
        z = _sym_circular_conv(y, w2_ref[blk], b2_ref[blk], B=B, L=L, p=p)
        h = jnp.maximum(z + res, 0.0)
        # TODO(synk): dropout > 0 and training-mode BatchNorm not implemented.
    o_ref[...] = h.astype(o_ref.dtype)


def path_block_forward(x, params, cycle_size):
    """PathBlock.forward: x (B*cycle_size, C) -> (B*cycle_size, C)."""
    N, C = x.shape
    L = cycle_size
    B = N // L
    nblk = len(params)
    K = params[0]["w1"].shape[0]
    assert K % 2 == 1, "only odd kernel sizes preserve length with circular padding"
    p = (K - 1) // 2

    # Host-side weight prep: fold BN scale into conv output channels, group the
    # symmetric taps as [center, pair(1), ..., pair(p)], and stack over blocks.
    def fold(w, scale):                             # w: (K, Cin, Cout), scale: (1, Cout)
        wf = w * scale[0][None, None, :]
        return jnp.stack([wf[p]] + [wf[p - t] for t in range(1, p + 1)], axis=0)

    W1 = jnp.stack([fold(b["w1"], b["s1"]) for b in params], axis=0)  # (nblk, p+1, C, Ci)
    B1 = jnp.stack([b["b1"] for b in params], axis=0)                 # (nblk, 1, Ci)
    W2 = jnp.stack([fold(b["w2"], b["s2"]) for b in params], axis=0)  # (nblk, p+1, Ci, C)
    B2 = jnp.stack([b["b2"] for b in params], axis=0)                 # (nblk, 1, C)

    kernel = functools.partial(_path_block_kernel, B=B, L=L, p=p, nblk=nblk)
    vmem = pl.BlockSpec(memory_space=pltpu.MemorySpace.VMEM)
    return pl.pallas_call(
        kernel,
        out_shape=jax.ShapeDtypeStruct((N, C), x.dtype),
        in_specs=[vmem] * 5,
        out_specs=vmem,
    )(x, W1, B1, W2, B2)


def init_path_block_params(key, hidden_channels, kernel_size=3,
                           num_resid_blocks=1, bottleneck=False, eps=1e-5):
    """Deterministic params: PyTorch-layout symmetric conv weights + eval-mode
    BatchNorm fold (randomized affine/running stats to exercise the fold)."""
    C = hidden_channels
    Ci = C // 2 if bottleneck else C
    params = []
    for _ in range(num_resid_blocks):
        key, *ks = jax.random.split(key, 11)
        # Conv weights in PyTorch layout (out, in, K).
        w1 = jax.random.normal(ks[0], (Ci, C, kernel_size), jnp.float32) * 0.2
        w2 = jax.random.normal(ks[1], (C, Ci, kernel_size), jnp.float32) * 0.2
        # SymmetricConv1D: (w + flip(w, dims=(2,))) / 2
        w1s = 0.5 * (w1 + w1[:, :, ::-1])
        w2s = 0.5 * (w2 + w2[:, :, ::-1])
        # Eval-mode BatchNorm1d fold: scale = gamma / sqrt(var + eps),
        # shift = beta - mean * scale.
        gamma1 = 1.0 + 0.1 * jax.random.normal(ks[2], (Ci,), jnp.float32)
        beta1 = 0.1 * jax.random.normal(ks[3], (Ci,), jnp.float32)
        mean1 = 0.1 * jax.random.normal(ks[4], (Ci,), jnp.float32)
        var1 = 1.0 + 0.1 * jax.random.uniform(ks[5], (Ci,), jnp.float32)
        gamma2 = 1.0 + 0.1 * jax.random.normal(ks[6], (C,), jnp.float32)
        beta2 = 0.1 * jax.random.normal(ks[7], (C,), jnp.float32)
        mean2 = 0.1 * jax.random.normal(ks[8], (C,), jnp.float32)
        var2 = 1.0 + 0.1 * jax.random.uniform(ks[9], (C,), jnp.float32)
        s1 = gamma1 / jnp.sqrt(var1 + eps)
        b1 = beta1 - mean1 * s1
        s2 = gamma2 / jnp.sqrt(var2 + eps)
        b2 = beta2 - mean2 * s2
        params.append(dict(
            w1=jnp.transpose(w1s, (2, 1, 0)),   # (K, C, Ci): w1[k][c_in, c_out]
            s1=s1.reshape(1, Ci), b1=b1.reshape(1, Ci),
            w2=jnp.transpose(w2s, (2, 1, 0)),   # (K, Ci, C)
            s2=s2.reshape(1, C), b2=b2.reshape(1, C),
        ))
    return params


def _ref_forward(x, params, cycle_size):
    """Pure-JAX reference: per-tap circular conv + unfused BN (validates both
    the BN-scale fold and the symmetric tap-pair trick used in the kernel)."""
    N, C = x.shape
    B = N // cycle_size
    L = cycle_size
    xc = x.reshape(B, L, C).astype(jnp.float32)
    hp = jax.lax.Precision.HIGHEST
    for blk in params:
        res = xc
        K = blk["w1"].shape[0]
        p = (K - 1) // 2
        y = jnp.zeros((B, L, blk["w1"].shape[2]), jnp.float32)
        for k in range(K):
            y = y + jnp.einsum("blc,cd->bld",
                               jnp.roll(xc, (p - k) % L, axis=1),
                               blk["w1"][k], precision=hp)
        y = jnp.maximum(y * blk["s1"][None] + blk["b1"][None], 0.0)
        z = jnp.zeros((B, L, blk["w2"].shape[2]), jnp.float32)
        for k in range(K):
            z = z + jnp.einsum("blc,cd->bld",
                               jnp.roll(y, (p - k) % L, axis=1),
                               blk["w2"][k], precision=hp)
        z = z * blk["s2"][None] + blk["b2"][None] + res
        xc = jnp.maximum(z, 0.0)
    return xc.reshape(N, C)


if __name__ == "__main__":
    hidden_channels = 32
    cycle_size = 8
    batch = 2                 # number of cycles
    num_resid_blocks = 2      # >1 to exercise the fused multi-block kernel

    key = jax.random.PRNGKey(0)
    key, kx = jax.random.split(key)
    # PathBlock input: (num_cycles * cycle_size, hidden_channels)
    x = jax.random.normal(kx, (batch * cycle_size, hidden_channels),
                          jnp.float32)

    params = init_path_block_params(key, hidden_channels,
                                    kernel_size=3,
                                    num_resid_blocks=num_resid_blocks)

    out = jax.block_until_ready(path_block_forward(x, params, cycle_size))
    ref = jax.block_until_ready(_ref_forward(x, params, cycle_size))

    # f32 MXU matmuls are ~f32-accurate at these sizes; 1e-4 has ample margin.
    np.testing.assert_allclose(np.asarray(out), np.asarray(ref),
                               rtol=1e-4, atol=1e-4)
    assert out.shape == x.shape
    print("KERNEL_OK")
</pallas_src>

<mosaic_0001>
module attributes {stable_mosaic.version = 11 : i64} {
  func.func @_path_block_kernel(%arg0: memref<16x32xf32, #tpu.memory_space<vmem>>, %arg1: memref<2x2x32x32xf32, #tpu.memory_space<vmem>>, %arg2: memref<2x1x32xf32, #tpu.memory_space<vmem>>, %arg3: memref<2x2x32x32xf32, #tpu.memory_space<vmem>>, %arg4: memref<2x1x32xf32, #tpu.memory_space<vmem>>, %arg5: memref<16x32xf32, #tpu.memory_space<vmem>>) attributes {dimension_semantics = [], scalar_prefetch = 0 : i64, scratch_operands = 0 : i64, tpu.core_type = #tpu.core_type<tc>} {
    %c0 = arith.constant 0 : index
    %c0_0 = arith.constant 0 : index
    %0 = vector.load %arg0[%c0, %c0_0] : memref<16x32xf32, #tpu.memory_space<vmem>>, vector<16x32xf32>
    %c0_1 = arith.constant 0 : index
    %c0_2 = arith.constant 0 : index
    %c0_3 = arith.constant 0 : index
    %c0_4 = arith.constant 0 : index
    %1 = vector.load %arg1[%c0_1, %c0_2, %c0_3, %c0_4] : memref<2x2x32x32xf32, #tpu.memory_space<vmem>>, vector<1x2x32x32xf32>
    %2 = vector.shape_cast %1 : vector<1x2x32x32xf32> to vector<2x32x32xf32>
    %c0_5 = arith.constant 0 : index
    %c0_6 = arith.constant 0 : index
    %c0_7 = arith.constant 0 : index
    %3 = vector.load %arg2[%c0_5, %c0_6, %c0_7] : memref<2x1x32xf32, #tpu.memory_space<vmem>>, vector<1x1x32xf32>
    %4 = vector.shape_cast %3 : vector<1x1x32xf32> to vector<1x32xf32>
    %5 = vector.extract_strided_slice %2 {offsets = [0, 0, 0], sizes = [1, 32, 32], strides = [1, 1, 1]} : vector<2x32x32xf32> to vector<1x32x32xf32>
    %6 = vector.shape_cast %5 : vector<1x32x32xf32> to vector<32x32xf32>
    %cst = arith.constant dense<0.000000e+00> : vector<16x32xf32>
    %7 = tpu.matmul %0, %6, %cst {dimension_numbers = #tpu.dot_dimension_numbers<[1], [0], [0], [1], [0, 0, 1, 1], [], []>} : vector<16x32xf32>, vector<32x32xf32>, vector<16x32xf32> -> vector<16x32xf32>
    %8 = vector.extract_strided_slice %0 {offsets = [0, 0], sizes = [8, 32], strides = [1, 1]} : vector<16x32xf32> to vector<8x32xf32>
    %c1_i32 = arith.constant 1 : i32
    %9 = tpu.dynamic_rotate %8 by %c1_i32 dim 0 : vector<8x32xf32>, i32 -> vector<8x32xf32>
    %c7_i32 = arith.constant 7 : i32
    %10 = tpu.dynamic_rotate %8 by %c7_i32 dim 0 : vector<8x32xf32>, i32 -> vector<8x32xf32>
    %11 = arith.addf %9, %10 : vector<8x32xf32>
    %12 = vector.extract_strided_slice %0 {offsets = [8, 0], sizes = [8, 32], strides = [1, 1]} : vector<16x32xf32> to vector<8x32xf32>
    %c1_i32_8 = arith.constant 1 : i32
    %13 = tpu.dynamic_rotate %12 by %c1_i32_8 dim 0 : vector<8x32xf32>, i32 -> vector<8x32xf32>
    %c7_i32_9 = arith.constant 7 : i32
    %14 = tpu.dynamic_rotate %12 by %c7_i32_9 dim 0 : vector<8x32xf32>, i32 -> vector<8x32xf32>
    %15 = arith.addf %13, %14 : vector<8x32xf32>
    %16 = tpu.concatenate %11, %15 in 0 : vector<8x32xf32>, vector<8x32xf32> -> vector<16x32xf32>
    %17 = vector.extract_strided_slice %2 {offsets = [1, 0, 0], sizes = [1, 32, 32], strides = [1, 1, 1]} : vector<2x32x32xf32> to vector<1x32x32xf32>
    %18 = vector.shape_cast %17 : vector<1x32x32xf32> to vector<32x32xf32>
    %cst_10 = arith.constant dense<0.000000e+00> : vector<16x32xf32>
    %19 = tpu.matmul %16, %18, %cst_10 {dimension_numbers = #tpu.dot_dimension_numbers<[1], [0], [0], [1], [0, 0, 1, 1], [], []>} : vector<16x32xf32>, vector<32x32xf32>, vector<16x32xf32> -> vector<16x32xf32>
    %20 = arith.addf %7, %19 : vector<16x32xf32>
    %21 = vector.broadcast %4 : vector<1x32xf32> to vector<16x32xf32>
    %22 = arith.addf %20, %21 : vector<16x32xf32>
    %cst_11 = arith.constant 0.000000e+00 : f32
    %23 = vector.broadcast %cst_11 : f32 to vector<16x32xf32>
    %24 = arith.maximumf %22, %23 : vector<16x32xf32>
    %c0_12 = arith.constant 0 : index
    %c0_13 = arith.constant 0 : index
    %c0_14 = arith.constant 0 : index
    %c0_15 = arith.constant 0 : index
    %25 = vector.load %arg3[%c0_12, %c0_13, %c0_14, %c0_15] : memref<2x2x32x32xf32, #tpu.memory_space<vmem>>, vector<1x2x32x32xf32>
    %26 = vector.shape_cast %25 : vector<1x2x32x32xf32> to vector<2x32x32xf32>
    %c0_16 = arith.constant 0 : index
    %c0_17 = arith.constant 0 : index
    %c0_18 = arith.constant 0 : index
    %27 = vector.load %arg4[%c0_16, %c0_17, %c0_18] : memref<2x1x32xf32, #tpu.memory_space<vmem>>, vector<1x1x32xf32>
    %28 = vector.shape_cast %27 : vector<1x1x32xf32> to vector<1x32xf32>
    %29 = vector.extract_strided_slice %26 {offsets = [0, 0, 0], sizes = [1, 32, 32], strides = [1, 1, 1]} : vector<2x32x32xf32> to vector<1x32x32xf32>
    %30 = vector.shape_cast %29 : vector<1x32x32xf32> to vector<32x32xf32>
    %cst_19 = arith.constant dense<0.000000e+00> : vector<16x32xf32>
    %31 = tpu.matmul %24, %30, %cst_19 {dimension_numbers = #tpu.dot_dimension_numbers<[1], [0], [0], [1], [0, 0, 1, 1], [], []>} : vector<16x32xf32>, vector<32x32xf32>, vector<16x32xf32> -> vector<16x32xf32>
    %32 = vector.extract_strided_slice %24 {offsets = [0, 0], sizes = [8, 32], strides = [1, 1]} : vector<16x32xf32> to vector<8x32xf32>
    %c1_i32_20 = arith.constant 1 : i32
    %33 = tpu.dynamic_rotate %32 by %c1_i32_20 dim 0 : vector<8x32xf32>, i32 -> vector<8x32xf32>
    %c7_i32_21 = arith.constant 7 : i32
    %34 = tpu.dynamic_rotate %32 by %c7_i32_21 dim 0 : vector<8x32xf32>, i32 -> vector<8x32xf32>
    %35 = arith.addf %33, %34 : vector<8x32xf32>
    %36 = vector.extract_strided_slice %24 {offsets = [8, 0], sizes = [8, 32], strides = [1, 1]} : vector<16x32xf32> to vector<8x32xf32>
    %c1_i32_22 = arith.constant 1 : i32
    %37 = tpu.dynamic_rotate %36 by %c1_i32_22 dim 0 : vector<8x32xf32>, i32 -> vector<8x32xf32>
    %c7_i32_23 = arith.constant 7 : i32
    %38 = tpu.dynamic_rotate %36 by %c7_i32_23 dim 0 : vector<8x32xf32>, i32 -> vector<8x32xf32>
    %39 = arith.addf %37, %38 : vector<8x32xf32>
    %40 = tpu.concatenate %35, %39 in 0 : vector<8x32xf32>, vector<8x32xf32> -> vector<16x32xf32>
    %41 = vector.extract_strided_slice %26 {offsets = [1, 0, 0], sizes = [1, 32, 32], strides = [1, 1, 1]} : vector<2x32x32xf32> to vector<1x32x32xf32>
    %42 = vector.shape_cast %41 : vector<1x32x32xf32> to vector<32x32xf32>
    %cst_24 = arith.constant dense<0.000000e+00> : vector<16x32xf32>
    %43 = tpu.matmul %40, %42, %cst_24 {dimension_numbers = #tpu.dot_dimension_numbers<[1], [0], [0], [1], [0, 0, 1, 1], [], []>} : vector<16x32xf32>, vector<32x32xf32>, vector<16x32xf32> -> vector<16x32xf32>
    %44 = arith.addf %31, %43 : vector<16x32xf32>
    %45 = vector.broadcast %28 : vector<1x32xf32> to vector<16x32xf32>
    %46 = arith.addf %44, %45 : vector<16x32xf32>
    %47 = arith.addf %46, %0 : vector<16x32xf32>
    %cst_25 = arith.constant 0.000000e+00 : f32
    %48 = vector.broadcast %cst_25 : f32 to vector<16x32xf32>
    %49 = arith.maximumf %47, %48 : vector<16x32xf32>
    %c1 = arith.constant 1 : index
    %c0_26 = arith.constant 0 : index
    %c0_27 = arith.constant 0 : index
    %c0_28 = arith.constant 0 : index
    %50 = vector.load %arg1[%c1, %c0_26, %c0_27, %c0_28] : memref<2x2x32x32xf32, #tpu.memory_space<vmem>>, vector<1x2x32x32xf32>
    %51 = vector.shape_cast %50 : vector<1x2x32x32xf32> to vector<2x32x32xf32>
    %c1_29 = arith.constant 1 : index
    %c0_30 = arith.constant 0 : index
    %c0_31 = arith.constant 0 : index
    %52 = vector.load %arg2[%c1_29, %c0_30, %c0_31] : memref<2x1x32xf32, #tpu.memory_space<vmem>>, vector<1x1x32xf32>
    %53 = vector.shape_cast %52 : vector<1x1x32xf32> to vector<1x32xf32>
    %54 = vector.extract_strided_slice %51 {offsets = [0, 0, 0], sizes = [1, 32, 32], strides = [1, 1, 1]} : vector<2x32x32xf32> to vector<1x32x32xf32>
    %55 = vector.shape_cast %54 : vector<1x32x32xf32> to vector<32x32xf32>
    %cst_32 = arith.constant dense<0.000000e+00> : vector<16x32xf32>
    %56 = tpu.matmul %49, %55, %cst_32 {dimension_numbers = #tpu.dot_dimension_numbers<[1], [0], [0], [1], [0, 0, 1, 1], [], []>} : vector<16x32xf32>, vector<32x32xf32>, vector<16x32xf32> -> vector<16x32xf32>
    %57 = vector.extract_strided_slice %49 {offsets = [0, 0], sizes = [8, 32], strides = [1, 1]} : vector<16x32xf32> to vector<8x32xf32>
    %c1_i32_33 = arith.constant 1 : i32
    %58 = tpu.dynamic_rotate %57 by %c1_i32_33 dim 0 : vector<8x32xf32>, i32 -> vector<8x32xf32>
    %c7_i32_34 = arith.constant 7 : i32
    %59 = tpu.dynamic_rotate %57 by %c7_i32_34 dim 0 : vector<8x32xf32>, i32 -> vector<8x32xf32>
    %60 = arith.addf %58, %59 : vector<8x32xf32>
    %61 = vector.extract_strided_slice %49 {offsets = [8, 0], sizes = [8, 32], strides = [1, 1]} : vector<16x32xf32> to vector<8x32xf32>
    %c1_i32_35 = arith.constant 1 : i32
    %62 = tpu.dynamic_rotate %61 by %c1_i32_35 dim 0 : vector<8x32xf32>, i32 -> vector<8x32xf32>
    %c7_i32_36 = arith.constant 7 : i32
    %63 = tpu.dynamic_rotate %61 by %c7_i32_36 dim 0 : vector<8x32xf32>, i32 -> vector<8x32xf32>
    %64 = arith.addf %62, %63 : vector<8x32xf32>
    %65 = tpu.concatenate %60, %64 in 0 : vector<8x32xf32>, vector<8x32xf32> -> vector<16x32xf32>
    %66 = vector.extract_strided_slice %51 {offsets = [1, 0, 0], sizes = [1, 32, 32], strides = [1, 1, 1]} : vector<2x32x32xf32> to vector<1x32x32xf32>
    %67 = vector.shape_cast %66 : vector<1x32x32xf32> to vector<32x32xf32>
    %cst_37 = arith.constant dense<0.000000e+00> : vector<16x32xf32>
    %68 = tpu.matmul %65, %67, %cst_37 {dimension_numbers = #tpu.dot_dimension_numbers<[1], [0], [0], [1], [0, 0, 1, 1], [], []>} : vector<16x32xf32>, vector<32x32xf32>, vector<16x32xf32> -> vector<16x32xf32>
    %69 = arith.addf %56, %68 : vector<16x32xf32>
    %70 = vector.broadcast %53 : vector<1x32xf32> to vector<16x32xf32>
    %71 = arith.addf %69, %70 : vector<16x32xf32>
    %cst_38 = arith.constant 0.000000e+00 : f32
    %72 = vector.broadcast %cst_38 : f32 to vector<16x32xf32>
    %73 = arith.maximumf %71, %72 : vector<16x32xf32>
    %c1_39 = arith.constant 1 : index
    %c0_40 = arith.constant 0 : index
    %c0_41 = arith.constant 0 : index
    %c0_42 = arith.constant 0 : index
    %74 = vector.load %arg3[%c1_39, %c0_40, %c0_41, %c0_42] : memref<2x2x32x32xf32, #tpu.memory_space<vmem>>, vector<1x2x32x32xf32>
    %75 = vector.shape_cast %74 : vector<1x2x32x32xf32> to vector<2x32x32xf32>
    %c1_43 = arith.constant 1 : index
    %c0_44 = arith.constant 0 : index
    %c0_45 = arith.constant 0 : index
    %76 = vector.load %arg4[%c1_43, %c0_44, %c0_45] : memref<2x1x32xf32, #tpu.memory_space<vmem>>, vector<1x1x32xf32>
    %77 = vector.shape_cast %76 : vector<1x1x32xf32> to vector<1x32xf32>
    %78 = vector.extract_strided_slice %75 {offsets = [0, 0, 0], sizes = [1, 32, 32], strides = [1, 1, 1]} : vector<2x32x32xf32> to vector<1x32x32xf32>
    %79 = vector.shape_cast %78 : vector<1x32x32xf32> to vector<32x32xf32>
    %cst_46 = arith.constant dense<0.000000e+00> : vector<16x32xf32>
    %80 = tpu.matmul %73, %79, %cst_46 {dimension_numbers = #tpu.dot_dimension_numbers<[1], [0], [0], [1], [0, 0, 1, 1], [], []>} : vector<16x32xf32>, vector<32x32xf32>, vector<16x32xf32> -> vector<16x32xf32>
    %81 = vector.extract_strided_slice %73 {offsets = [0, 0], sizes = [8, 32], strides = [1, 1]} : vector<16x32xf32> to vector<8x32xf32>
    %c1_i32_47 = arith.constant 1 : i32
    %82 = tpu.dynamic_rotate %81 by %c1_i32_47 dim 0 : vector<8x32xf32>, i32 -> vector<8x32xf32>
    %c7_i32_48 = arith.constant 7 : i32
    %83 = tpu.dynamic_rotate %81 by %c7_i32_48 dim 0 : vector<8x32xf32>, i32 -> vector<8x32xf32>
    %84 = arith.addf %82, %83 : vector<8x32xf32>
    %85 = vector.extract_strided_slice %73 {offsets = [8, 0], sizes = [8, 32], strides = [1, 1]} : vector<16x32xf32> to vector<8x32xf32>
    %c1_i32_49 = arith.constant 1 : i32
    %86 = tpu.dynamic_rotate %85 by %c1_i32_49 dim 0 : vector<8x32xf32>, i32 -> vector<8x32xf32>
    %c7_i32_50 = arith.constant 7 : i32
    %87 = tpu.dynamic_rotate %85 by %c7_i32_50 dim 0 : vector<8x32xf32>, i32 -> vector<8x32xf32>
    %88 = arith.addf %86, %87 : vector<8x32xf32>
    %89 = tpu.concatenate %84, %88 in 0 : vector<8x32xf32>, vector<8x32xf32> -> vector<16x32xf32>
    %90 = vector.extract_strided_slice %75 {offsets = [1, 0, 0], sizes = [1, 32, 32], strides = [1, 1, 1]} : vector<2x32x32xf32> to vector<1x32x32xf32>
    %91 = vector.shape_cast %90 : vector<1x32x32xf32> to vector<32x32xf32>
    %cst_51 = arith.constant dense<0.000000e+00> : vector<16x32xf32>
    %92 = tpu.matmul %89, %91, %cst_51 {dimension_numbers = #tpu.dot_dimension_numbers<[1], [0], [0], [1], [0, 0, 1, 1], [], []>} : vector<16x32xf32>, vector<32x32xf32>, vector<16x32xf32> -> vector<16x32xf32>
    %93 = arith.addf %80, %92 : vector<16x32xf32>
    %94 = vector.broadcast %77 : vector<1x32xf32> to vector<16x32xf32>
    %95 = arith.addf %93, %94 : vector<16x32xf32>
    %96 = arith.addf %95, %49 : vector<16x32xf32>
    %cst_52 = arith.constant 0.000000e+00 : f32
    %97 = vector.broadcast %cst_52 : f32 to vector<16x32xf32>
    %98 = arith.maximumf %96, %97 : vector<16x32xf32>
    %c0_53 = arith.constant 0 : index
    %c0_54 = arith.constant 0 : index
    %99 = vector.load %arg5[%c0_53, %c0_54] : memref<16x32xf32, #tpu.memory_space<vmem>>, vector<16x32xf32>
    tpu.vector_store %arg5[%c0_53, %c0_54], %98 {strides = array<i32>} : memref<16x32xf32, #tpu.memory_space<vmem>>, vector<16x32xf32>,
    return
  }
}

</mosaic_0001>

<bundles_post_ra>
// kernel: tpu_custom_call.1
= control target key start
LH: loop header
LB: loop body
LE: loop exit
PB: predicated region body
PF: predicated region fallthrough
CT: control target
= control target key end

     0   :  { %10 = vsyncpa [#allocation3], 0  ;;  %s1316_s0 = inlined_call_operand.hbm [shape: f32[16,32], index: 0, kind: input, shape index: {}]   ;;  %s1317_s1 = inlined_call_operand.hbm [shape: f32[2,2,32,32], index: 1, kind: input, shape index: {}]   ;;  %s1318_s2 = inlined_call_operand.vmem [shape: f32[2,1,32], index: 2, kind: input, shape index: {}]   ;;  %s1319_s3 = inlined_call_operand.hbm [shape: f32[2,2,32,32], index: 3, kind: input, shape index: {}]   ;;  %s1320_s4 = inlined_call_operand.vmem [shape: f32[2,1,32], index: 4, kind: input, shape index: {}]   ;;  %s1321_s5 = inlined_call_operand.hbm [shape: f32[16,32], index: 5, kind: output, shape index: {}]  }
   0x1   :  { %11 = vsyncpa [#allocation6], 0 }
   0x2   :  { %12 = vsyncpa [#allocation4], 0  ;;  %s1171_s18 = smov [#allocation5]   ;;  %s1172_s20 = smov [#allocation2]  }
   0x3   :  { %s30_s19 = sshll.u32 %s1171_s18, 4  ;;  %s18_s21 = sshll.u32 %s1172_s20, 4  ;;  %s31_s19 = int_to_ptr.vmem [resolvable:$true] %s30_s19  ;;  %s1207_s21 = int_to_ptr.vmem [resolvable:$true] %s18_s21 }
   0x4   :  { %s1077_s24 = scalar_lea.hbm %s1317_s1, 2048 }
   0x5   :  { %p1078_p0 = scmp.ne.s32.totalorder %s1317_s1, %s1077_s24  ;;  %p1081_p1 = scmp.lt.u32.totalorder %s1077_s24, %s1317_s1 }
   0x7   :  { %p1083_p2 = pnand %p1081_p1, %p1078_p0 }
   0x9   :  { %1086 = shalt.err (!%p1083_p2)
}
   0xa   :  { %s1087_s29 = scalar_lea.vmem %s31_s19, 2048  ;;  %p1092_p4 = scmp.lt.s32.totalorder %s31_s19, %s31_s19 }
   0xb   :  { %p1088_p3 = scmp.ne.s32.totalorder %s31_s19, %s1087_s29  ;;  %p1093_p5 = scmp.lt.s32.totalorder %s1087_s29, %s1087_s29 }
   0xd   :  { %p1094_p6 = por %p1093_p5, %p1092_p4 }
   0xf   :  { %p1095_p7 = pnand %p1094_p6, %p1088_p3 }
  0x11   :  { %1098 = shalt.err (!%p1095_p7)
}
  0x12   :  { %s1173_s30 = smov 128   ;;  %s1174_s6 = smov 8  }
  0x13   :  { %36 = dma.hbm_to_vmem [thread:$0]  %s1317_s1, 2048, %s31_s19, [#allocation6], %s1173_s30, %s1173_s30, %s1174_s6  }
  0x14   :  { %s1099_s11 = scalar_lea.hbm %s1316_s0, 256 }
  0x15   :  { %p1100_p8 = scmp.ne.s32.totalorder %s1316_s0, %s1099_s11  ;;  %p1103_p9 = scmp.lt.u32.totalorder %s1099_s11, %s1316_s0 }
  0x17   :  { %p1105_p10 = pnand %p1103_p9, %p1100_p8 }
  0x19   :  { %1108 = shalt.err (!%p1105_p10)
}
  0x1a   :  { %s1109_s16 = scalar_lea.vmem %s1207_s21, 256  ;;  %p1114_p12 = scmp.lt.s32.totalorder %s1207_s21, %s1207_s21 }
  0x1b   :  { %p1110_p11 = scmp.ne.s32.totalorder %s1207_s21, %s1109_s16  ;;  %p1115_p13 = scmp.lt.s32.totalorder %s1109_s16, %s1109_s16 }
  0x1d   :  { %p1116_p0 = por %p1115_p13, %p1114_p12 }
  0x1f   :  { %p1117_p1 = pnand %p1116_p0, %p1110_p11 }
  0x21   :  { %1120 = shalt.err (!%p1117_p1)
}
  0x22   :  { %24 = dma.hbm_to_vmem [thread:$0]  %s1316_s0, 256, %s1207_s21, [#allocation3], %s1173_s30, %s1173_s30, %s1174_s6  }
  0x23   :  { %s1175_s18 = smov [#allocation7]   ;;  %s1121_s23 = scalar_lea.hbm %s1319_s3, 2048 }
  0x24   :  { %s44_s19 = sshll.u32 %s1175_s18, 4  ;;  %p1122_p2 = scmp.ne.s32.totalorder %s1319_s3, %s1121_s23  ;;  %s45_s19 = int_to_ptr.vmem [resolvable:$true] %s44_s19 }
  0x25   :  { %p1125_p3 = scmp.lt.u32.totalorder %s1121_s23, %s1319_s3 }
  0x27   :  { %p1127_p4 = pnand %p1125_p3, %p1122_p2 }
  0x29   :  { %1130 = shalt.err (!%p1127_p4)
}
  0x2a   :  { %s1131_s28 = scalar_lea.vmem %s45_s19, 2048  ;;  %p1136_p6 = scmp.lt.s32.totalorder %s45_s19, %s45_s19 }
  0x2b   :  { %p1132_p5 = scmp.ne.s32.totalorder %s45_s19, %s1131_s28  ;;  %p1137_p7 = scmp.lt.s32.totalorder %s1131_s28, %s1131_s28 }
  0x2d   :  { %p1138_p8 = por %p1137_p7, %p1136_p6 }
  0x2f   :  { %p1139_p9 = pnand %p1138_p8, %p1132_p5 }
  0x31   :  { %1142 = shalt.err (!%p1139_p9)
}
  0x32   :  { %50 = dma.hbm_to_vmem [thread:$0]  %s1319_s3, 2048, %s45_s19, [#allocation6], %s1173_s30, %s1173_s30, %s1174_s6  }
  0x33   :  { %1165 = dma.done.wait [#allocation3], 256  }
  0x34   :  { %1166 = vsyncadd [#allocation3], 4294967040 }
  0x35   :  { %1167 = dma.done.wait [#allocation6], 4096  }
  0x36   :  { %1168 = vsyncadd [#allocation6], 4294963200  ;;  %v68_v0 = vld [vmem:[#allocation5 + $0x20] sm:$0xff]  ;;  %v69_v1 = vld [vmem:[#allocation5 + $0x28] sm:$0xff]  ;;  %vm79_vm0 = vcmask 261120   ;;  %s1176_s12 = smov [#allocation8]  }
  0x37   :  { %v70_v2 = vld [vmem:[#allocation5 + $0x30] sm:$0xff]  ;;  %v999_v3 = vpack.c.bf16 %v69_v1, %v68_v0  ;;  %v71_v4 = vld [vmem:[#allocation5 + $0x38] sm:$0xff]  ;;  %v64_v10 = vld [vmem:[#allocation5] sm:$0xff]  ;;  %s828_s13 = sshll.u32 %s1176_s12, 4  ;;  %s829_s13 = int_to_ptr.vmem [resolvable:$true] %s828_s13 }
  0x38   :  { %v1259_v5 = vld [vmem:[#allocation2] sm:$0xff]  ;;  %v1261_v6 = vld [vmem:[#allocation2 + $0x8] sm:$0xff]  ;;  %v1003_v7 = vpack.c.bf16 %v71_v4, %v70_v2  ;;  %v65_v11 = vld [vmem:[#allocation5 + $0x8] sm:$0xff]  ;;  %s1143_s14 = scalar_lea.vmem %s829_s13, 256  ;;  %p1148_p11 = scmp.lt.s32.totalorder %s829_s13, %s829_s13 }
  0x39   :  { %v73_v8 = vrot.slane %v1259_v5, 7  ;;  %v74_v9 = vrot.slane %v1259_v5, 1  ;;  %1000 = vmatprep.subr.bf16.mxu0 %v999_v3  ;;  %v76_v12 = vrot.slane %v1261_v6, 7  ;;  %v77_v13 = vrot.slane %v1261_v6, 1  ;;  %v66_v16 = vld [vmem:[#allocation5 + $0x10] sm:$0xff]  ;;  %v67_v17 = vld [vmem:[#allocation5 + $0x18] sm:$0xff]  ;;  %p1144_p10 = scmp.ne.s32.totalorder %s829_s13, %s1143_s14  ;;  %p1149_p12 = scmp.lt.s32.totalorder %s1143_s14, %s1143_s14 }
  0x3a   :  { %1002 = vmatpush3.bf16.msra.mxu0 %v999_v3  ;;  %v1007_v15 = vpack.c.bf16 %v65_v11, %v64_v10  ;;  %v1011_v19 = vpack.c.bf16 %v67_v17, %v66_v16  ;;  %v256_v20 = vld [vmem:[#allocation7 + $0x20] sm:$0xff]  ;;  %v257_v21 = vld [vmem:[#allocation7 + $0x28] sm:$0xff]  ;;  %v258_v23 = vld [vmem:[#allocation7 + $0x30] sm:$0xff] }
  0x3b   :  { %v75_v14 = vadd.f32 %v74_v9, %v73_v8  ;;  %1004 = vmatprep.subr.bf16.mxu0 %v1003_v7  ;;  %v78_v18 = vadd.f32 %v77_v13, %v76_v12  ;;  %v1015_v22 = vpack.c.bf16 %v257_v21, %v256_v20  ;;  %v259_v24 = vld [vmem:[#allocation7 + $0x38] sm:$0xff]  ;;  %v252_v26 = vld [vmem:[#allocation7] sm:$0xff]  ;;  %v253_v27 = vld [vmem:[#allocation7 + $0x8] sm:$0xff]  ;;  %p1150_p13 = por %p1149_p12, %p1148_p11 }
  0x3c   :  { %v1019_v25 = vpack.c.bf16 %v259_v24, %v258_v23  ;;  %v1023_v28 = vpack.c.bf16 %v253_v27, %v252_v26  ;;  %v845_v29 = vld [vmem:[%s1318_s2] ss:$0 sm:$0xff]  ;;  %v255_v41 = vld [vmem:[#allocation7 + $0x18] sm:$0xff]  ;;  %v446_v45 = vld [vmem:[#allocation5 + $0x60] sm:$0xff] }
  0x3d   :  { %919 = vmatprep.mubr.msk.f32.mxu0 %vm79_vm0, %v75_v14  ;;  %1016 = vmatprep.subr.bf16.mxu1 %v1015_v22  ;;  %v254_v40 = vld [vmem:[#allocation7 + $0x10] sm:$0xff]  ;;  %v447_v46 = vld [vmem:[#allocation5 + $0x68] sm:$0xff]  ;;  %v449_v49 = vld [vmem:[#allocation5 + $0x78] sm:$0xff]  ;;  %p1151_p0 = pnand %p1150_p13, %p1144_p10 }
  0x3e   :  { %1006 = vmatpush3.bf16.msra.mxu0 %v1003_v7  ;;  %1018 = vmatpush3.bf16.msra.mxu1 %v1015_v22  ;;  %v1027_v44 = vpack.c.bf16 %v255_v41, %v254_v40  ;;  %v1031_v47 = vpack.c.bf16 %v447_v46, %v446_v45  ;;  %v448_v48 = vld [vmem:[#allocation5 + $0x70] sm:$0xff]  ;;  %v442_v51 = vld [vmem:[#allocation5 + $0x40] sm:$0xff]  ;;  %v443_v52 = vld [vmem:[#allocation5 + $0x48] sm:$0xff] }
  0x3f   :  { %1008 = vmatprep.subr.bf16.mxu0 %v1007_v15  ;;  %1020 = vmatprep.subr.bf16.mxu1 %v1019_v25  ;;  %v1035_v50 = vpack.c.bf16 %v449_v49, %v448_v48  ;;  %v1039_v53 = vpack.c.bf16 %v443_v52, %v442_v51  ;;  %v850_v54 = vld [vmem:[%s1320_s4] ss:$0 sm:$0xff]  ;;  %v445_v4 = vld [vmem:[#allocation5 + $0x58] sm:$0xff]  ;;  %v631_v14 = vld [vmem:[#allocation7 + $0x40] sm:$0xff] }
  0x40   :  { %v444_v3 = vld [vmem:[#allocation5 + $0x50] sm:$0xff]  ;;  %v638_v12 = vld [vmem:[#allocation7 + $0x78] sm:$0xff] }
  0x41   :  { %920 = vmatmul.mubr.msk.f32.vlgmr.msra.gmra.mrb[0].mxu0 %vm79_vm0, %v78_v18  ;;  %v1043_v9 = vpack.c.bf16 %v445_v4, %v444_v3  ;;  %v637_v11 = vld [vmem:[#allocation7 + $0x70] sm:$0xff] }
  0x42   :  { %1010 = vmatpush3.bf16.msra.mxu0 %v1007_v15  ;;  %930 = vmatprep.mubr.msk.f32.mxu0 %vm79_vm0, %v1259_v5  ;;  %v1051_v13 = vpack.c.bf16 %v638_v12, %v637_v11  ;;  %v632_v15 = vld [vmem:[#allocation7 + $0x48] sm:$0xff]  ;;  %v856_v17 = vld [vmem:[%s1318_s2 + $0x1] ss:$0 sm:$0xff] }
  0x43   :  { %1012 = vmatprep.subr.bf16.mxu0 %v1011_v19  ;;  %1022 = vmatpush3.bf16.msra.mxu1 %v1019_v25  ;;  %v1055_v16 = vpack.c.bf16 %v632_v15, %v631_v14 }
  0x44   :  { %1024 = vmatprep.subr.bf16.mxu1 %v1023_v28 }
  0x46   :  { %1014 = vmatpush3.bf16.msra.mxu0 %v1011_v19 }
  0x47   :  { %1032 = vmatprep.subr.bf16.mxu0 %v1031_v47 }
  0x49   :  { %931 = vmatmul.mubr.msk.f32.vlgmr.msra.gmra.mrb[0].mxu0 %vm79_vm0, %v1261_v6 }
  0x4a   :  { %1034 = vmatpush3.bf16.msra.mxu0 %v1031_v47 }
  0x4b   :  { %1036 = vmatprep.subr.bf16.mxu0 %v1035_v50 }
  0x4e   :  { %1038 = vmatpush3.bf16.msra.mxu0 %v1035_v50 }
  0x4f   :  { %1040 = vmatprep.subr.bf16.mxu0 %v1039_v53 }
 0x11c   :  { %v932_v30 = vpop.f32.mrb[0].mxu0 }
 0x11d   :  { %v249_v31 = vadd.f32 %v932_v30, %v845_v29  ;;  %v233_v32 = vpop.f32.mrb[1].mxu0 }
 0x11e   :  { %v248_v33 = vadd.f32 %v845_v29, %v233_v32  ;;  %v634_v29 = vld [vmem:[#allocation7 + $0x58] sm:$0xff] }
 0x11f   :  { %v251_v34 = vmax.f32 %v249_v31, 0.0 }
 0x120   :  { %v250_v35 = vmax.f32 %v248_v33, 0.0  ;;  %v862_v33 = vld [vmem:[%s1320_s4 + $0x1] ss:$0 sm:$0xff] }
 0x121   :  { %v264_v36 = vrot.slane %v251_v34, 7  ;;  %v265_v37 = vrot.slane %v251_v34, 1 }
 0x122   :  { %v261_v38 = vrot.slane %v250_v35, 7  ;;  %v262_v39 = vrot.slane %v250_v35, 1 }
 0x123   :  { %v266_v43 = vadd.f32 %v265_v37, %v264_v36 }
 0x124   :  { %v263_v42 = vadd.f32 %v262_v39, %v261_v38 }
 0x126   :  { %941 = vmatprep.mubr.msk.f32.mxu1 %vm79_vm0, %v263_v42 }
 0x127   :  { %942 = vmatmul.mubr.msk.f32.vlgmr.msra.gmra.mrb[0].mxu1 %vm79_vm0, %v266_v43 }
 0x128   :  { %1026 = vmatpush3.bf16.msra.mxu1 %v1023_v28  ;;  %952 = vmatprep.mubr.msk.f32.mxu1 %vm79_vm0, %v250_v35  ;;  %v633_v28 = vld [vmem:[#allocation7 + $0x50] sm:$0xff] }
 0x129   :  { %1028 = vmatprep.subr.bf16.mxu1 %v1027_v44  ;;  %v1059_v32 = vpack.c.bf16 %v634_v29, %v633_v28 }
 0x12c   :  { %1030 = vmatpush3.bf16.msra.mxu1 %v1027_v44 }
 0x12f   :  { %953 = vmatmul.mubr.msk.f32.vlgmr.msra.gmra.mrb[0].mxu1 %vm79_vm0, %v251_v34 }
 0x202   :  { %v954_v55 = vpop.f32.mrb[0].mxu1 }
 0x203   :  { %v436_v56 = vadd.f32 %v954_v55, %v850_v54  ;;  %v420_v57 = vpop.f32.mrb[1].mxu1 }
 0x204   :  { %v435_v58 = vadd.f32 %v850_v54, %v420_v57 }
 0x205   :  { %v438_v59 = vadd.f32 %v436_v56, %v1261_v6  ;;  %v636_v6 = vld [vmem:[#allocation7 + $0x68] sm:$0xff] }
 0x206   :  { %v437_v60 = vadd.f32 %v435_v58, %v1259_v5  ;;  %v635_v5 = vld [vmem:[#allocation7 + $0x60] sm:$0xff] }
 0x207   :  { %v440_v61 = vmax.f32 %v438_v59, 0.0  ;;  %v1047_v10 = vpack.c.bf16 %v636_v6, %v635_v5 }
 0x208   :  { %v439_v62 = vmax.f32 %v437_v60, 0.0 }
 0x209   :  { %v455_v63 = vrot.slane %v440_v61, 7  ;;  %v456_v0 = vrot.slane %v440_v61, 1  ;;  %1048 = vmatprep.subr.bf16.mxu1 %v1047_v10 }
 0x20a   :  { %v452_v1 = vrot.slane %v439_v62, 7  ;;  %v453_v2 = vrot.slane %v439_v62, 1  ;;  %1050 = vmatpush3.bf16.msra.mxu1 %v1047_v10 }
 0x20b   :  { %v457_v8 = vadd.f32 %v456_v0, %v455_v63  ;;  %1052 = vmatprep.subr.bf16.mxu1 %v1051_v13 }
 0x20c   :  { %v454_v7 = vadd.f32 %v453_v2, %v452_v1 }
 0x20e   :  { %963 = vmatprep.mubr.msk.f32.mxu0 %vm79_vm0, %v454_v7  ;;  %1054 = vmatpush3.bf16.msra.mxu1 %v1051_v13 }
 0x20f   :  { %964 = vmatmul.mubr.msk.f32.vlgmr.msra.gmra.mrb[2].mxu0 %vm79_vm0, %v457_v8  ;;  %1056 = vmatprep.subr.bf16.mxu1 %v1055_v16 }
 0x210   :  { %1042 = vmatpush3.bf16.msra.mxu0 %v1039_v53  ;;  %974 = vmatprep.mubr.msk.f32.mxu0 %vm79_vm0, %v439_v62 }
 0x211   :  { %1044 = vmatprep.subr.bf16.mxu0 %v1043_v9 }
 0x214   :  { %1046 = vmatpush3.bf16.msra.mxu0 %v1043_v9 }
 0x217   :  { %975 = vmatmul.mubr.msk.f32.vlgmr.msra.gmra.mrb[2].mxu0 %vm79_vm0, %v440_v61 }
 0x2ea   :  { %v976_v18 = vpop.f32.mrb[2].mxu0 }
 0x2eb   :  { %v627_v19 = vadd.f32 %v976_v18, %v856_v17  ;;  %v611_v20 = vpop.f32.mrb[3].mxu0 }
 0x2ec   :  { %v626_v21 = vadd.f32 %v856_v17, %v611_v20 }
 0x2ed   :  { %v629_v22 = vmax.f32 %v627_v19, 0.0 }
 0x2ee   :  { %v628_v23 = vmax.f32 %v626_v21, 0.0 }
 0x2ef   :  { %v644_v24 = vrot.slane %v629_v22, 7  ;;  %v645_v25 = vrot.slane %v629_v22, 1 }
 0x2f0   :  { %v641_v26 = vrot.slane %v628_v23, 7  ;;  %v642_v27 = vrot.slane %v628_v23, 1 }
 0x2f1   :  { %v646_v31 = vadd.f32 %v645_v25, %v644_v24 }
 0x2f2   :  { %v643_v30 = vadd.f32 %v642_v27, %v641_v26 }
 0x2f4   :  { %985 = vmatprep.mubr.msk.f32.mxu1 %vm79_vm0, %v643_v30 }
 0x2f5   :  { %986 = vmatmul.mubr.msk.f32.vlgmr.msra.gmra.mrb[2].mxu1 %vm79_vm0, %v646_v31 }
 0x2f6   :  { %1058 = vmatpush3.bf16.msra.mxu1 %v1055_v16  ;;  %996 = vmatprep.mubr.msk.f32.mxu1 %vm79_vm0, %v628_v23 }
 0x2f7   :  { %1060 = vmatprep.subr.bf16.mxu1 %v1059_v32 }
 0x2fa   :  { %1062 = vmatpush3.bf16.msra.mxu1 %v1059_v32 }
 0x2fd   :  { %997 = vmatmul.mubr.msk.f32.vlgmr.msra.gmra.mrb[2].mxu1 %vm79_vm0, %v629_v22 }
 0x3d0   :  { %v998_v34 = vpop.f32.mrb[2].mxu1 }
 0x3d1   :  { %v816_v35 = vadd.f32 %v998_v34, %v862_v33  ;;  %v800_v36 = vpop.f32.mrb[3].mxu1 }
 0x3d2   :  { %v815_v37 = vadd.f32 %v862_v33, %v800_v36 }
 0x3d3   :  { %v818_v38 = vadd.f32 %v816_v35, %v440_v61 }
 0x3d4   :  { %v817_v39 = vadd.f32 %v815_v37, %v439_v62 }
 0x3d5   :  { %v820_v40 = vmax.f32 %v818_v38, 0.0 }
 0x3d6   :  { %v819_v41 = vmax.f32 %v817_v39, 0.0 }
 0x3d7   :  { %822 = vst.msk [vmem:[#allocation8 + $0x8] sm:$0xff] %vm79_vm0, %v820_v40 }
 0x3d8   :  { %821 = vst.msk [vmem:[#allocation8] sm:$0xff] %vm79_vm0, %v819_v41 }
 0x3d9   :  { %1154 = shalt.err (!%p1151_p0)
}
 0x3da   :  { %s1155_s16 = scalar_lea.hbm %s1321_s5, 256 }
 0x3db   :  { %p1156_p1 = scmp.ne.s32.totalorder %s1321_s5, %s1155_s16  ;;  %p1159_p2 = scmp.lt.u32.totalorder %s1155_s16, %s1321_s5 }
 0x3dd   :  { %p1161_p3 = pnand %p1159_p2, %p1156_p1 }
 0x3df   :  { %1164 = shalt.err (!%p1161_p3)
}
 0x3e0   :  { %834 = dma.vmem_to_hbm [thread:$0]  %s829_s13, 256, %s1321_s5, [#allocation4], %s1173_s30, %s1173_s30, %s1174_s6  }
 0x3e1   :  { %1169 = dma.done.wait [#allocation4], 256  }
 0x3e2   :  { %1170 = vsyncadd [#allocation4], 4294967040 }
 0x3e3   :  { %838 = vsyncpa [#allocation3], 1 }
 0x3e4   :  { %839 = vsyncpa [#allocation6], 1 }
 0x3e5   :  { %840 = vsyncpa [#allocation4], 1 }

</bundles_post_ra>
